<compile_context>
chip_gen: v5e
topology: v5e:2x2
jax: 0.10.0
libtpu: 0.0.40
codegen_flags: <defaults>
</compile_context>

<pallas_src>
import jax
import jax.numpy as jnp
from jax.experimental import pallas as pl
from jax.experimental.pallas import tpu as pltpu


def _locked_dropout_kernel(x_ref, mask_ref, o_ref):
    # x_ref    : (TL, B, D) tile of x
    # mask_ref : (1,  B, D) pre-scaled keep-mask; broadcasts over TL on the VPU
    # o_ref    : (TL, B, D) output tile
    o_ref[...] = x_ref[...] * mask_ref[...]


def locked_dropout(x, dropout=0.5, *, key=None, training=True):
    """Applies locked (variational) dropout over the Length axis of x.

    x: [Length, Batch, Dim]. One mask of shape [1, Batch, Dim] is sampled and
    shared across every Length position, matching the PyTorch module.
    """
    if not training or not dropout:
        return x
    if dropout >= 1.0:
        raise ValueError("dropout must be < 1.0 for LockedDropout")

    L, B, D = x.shape
    if key is None:
        key = jax.random.PRNGKey(0)

    # Bernoulli(1-p) mask in plain JAX, pre-scaled by 1/(1-p), cast to x.dtype
    # (1/(1-p) for p=0.5 is exact in bf16; compute stays in f32 until cast).
    keep = jax.random.bernoulli(key, p=1.0 - float(dropout), shape=(1, B, D))
    scale = jnp.asarray(1.0 / (1.0 - float(dropout)), dtype=jnp.float32)
    mask = (keep.astype(jnp.float32) * scale).astype(x.dtype)

    # Block the Length axis: target ~1 MiB per x tile -- big enough to hit the
    # HBM roofline, small enough that double-buffered in+out tiles fit the
    # 16 MiB (v5e) scoped-VMEM default and v7x's 64 MiB physical VMEM.
    bytes_per_row = B * D * x.dtype.itemsize
    tl = max(1, min(L, (1 << 20) // max(bytes_per_row, 1)))
    while L % tl:  # keep the grid exact (no ragged edge tiles)
        tl -= 1

    grid = (L // tl,)

    # TODO(synk): if D is not a multiple of 128, flatten to [L, 1, B*D] in the
    # wrapper for lane-dense stores (pure layout plumbing, semantics unchanged).

    return pl.pallas_call(
        _locked_dropout_kernel,
        out_shape=jax.ShapeDtypeStruct((L, B, D), x.dtype),
        grid=grid,
        in_specs=[
            pl.BlockSpec((tl, B, D), lambda l: (l, 0, 0)),
            # Same block index at every grid step -> mask stays resident in
            # VMEM, no re-DMA across the Length loop.
            pl.BlockSpec((1, B, D), lambda l: (0, 0, 0)),
        ],
        out_specs=pl.BlockSpec((tl, B, D), lambda l: (l, 0, 0)),
        compiler_params=pltpu.CompilerParams(
            # Every grid step is independent (mask is a read-only input), so
            # the Length axis can be sharded across TensorCores on v7x.
            dimension_semantics=("parallel",),
            vmem_limit_bytes=32 * 1024 * 1024,
        ),
    )(x, mask)


if __name__ == "__main__":
    # Small shapes consistent with [Length, Batch, Dim]
    L, B, D = 8, 8, 128
    root = jax.random.PRNGKey(0)
    x_key, mask_key = jax.random.split(root)
    x = jax.random.normal(x_key, (L, B, D), dtype=jnp.float32)

    dropout = 0.5
    y = locked_dropout(x, dropout=dropout, key=mask_key, training=True)
    y = jax.block_until_ready(y)

    # Sanity checks of LockedDropout semantics:
    # 1) mask is locked across Length: implied per-position mask identical.
    ratio = jnp.where(x != 0, y / x, 0.0)
    locked = bool(jnp.all(jnp.abs(ratio - ratio[0:1]) < 1e-5))
    # 2) values are either 0 or x / (1 - p).
    valid_vals = bool(
        jnp.all(
            (jnp.abs(y) < 1e-6)
            | (jnp.abs(y - x / (1.0 - dropout)) < 1e-5)
        )
    )
    # 3) eval mode / dropout=0 is identity.
    ident = bool(jnp.all(locked_dropout(x, dropout=0.0) == x)) and bool(
        jnp.all(locked_dropout(x, dropout=dropout, training=False) == x)
    )

    assert locked and valid_vals and ident, (locked, valid_vals, ident)
    print("KERNEL_OK")
</pallas_src>

<mosaic_0001>
module attributes {stable_mosaic.version = 11 : i64} {
  func.func @_locked_dropout_kernel(%arg0: i32, %arg1: memref<8x8x128xf32, #tpu.memory_space<vmem>>, %arg2: memref<1x8x128xf32, #tpu.memory_space<vmem>>, %arg3: memref<8x8x128xf32, #tpu.memory_space<vmem>>) attributes {dimension_semantics = [#tpu.dimension_semantics<parallel>], iteration_bounds = array<i64: 1>, scalar_prefetch = 0 : i64, scratch_operands = 0 : i64, tpu.core_type = #tpu.core_type<tc>, window_params = [{transform_indices = @transform_0, window_bounds = array<i64: 8, 8, 128>}, {pipeline_mode = #tpu.pipeline_mode<synchronous>, transform_indices = @transform_1, window_bounds = array<i64: 1, 8, 128>}, {transform_indices = @transform_2, window_bounds = array<i64: 8, 8, 128>}]} {
    %c0 = arith.constant 0 : index
    %c0_0 = arith.constant 0 : index
    %c0_1 = arith.constant 0 : index
    %0 = vector.load %arg1[%c0, %c0_0, %c0_1] : memref<8x8x128xf32, #tpu.memory_space<vmem>>, vector<8x8x128xf32>
    %c0_2 = arith.constant 0 : index
    %c0_3 = arith.constant 0 : index
    %c0_4 = arith.constant 0 : index
    %1 = vector.load %arg2[%c0_2, %c0_3, %c0_4] : memref<1x8x128xf32, #tpu.memory_space<vmem>>, vector<1x8x128xf32>
    %2 = vector.broadcast %1 : vector<1x8x128xf32> to vector<8x8x128xf32>
    %3 = arith.mulf %0, %2 : vector<8x8x128xf32>
    %c0_5 = arith.constant 0 : index
    %c0_6 = arith.constant 0 : index
    %c0_7 = arith.constant 0 : index
    %4 = vector.load %arg3[%c0_5, %c0_6, %c0_7] : memref<8x8x128xf32, #tpu.memory_space<vmem>>, vector<8x8x128xf32>
    tpu.vector_store %arg3[%c0_5, %c0_6, %c0_7], %3 {strides = array<i32>} : memref<8x8x128xf32, #tpu.memory_space<vmem>>, vector<8x8x128xf32>,
    return
  }
  func.func @transform_0(%arg0: i32) -> (i32, i32, i32) {
    %c0_i32 = arith.constant 0 : i32
    %c0_i32_0 = arith.constant 0 : i32
    %c0_i32_1 = arith.constant 0 : i32
    return %arg0, %c0_i32, %c0_i32_0 : i32, i32, i32
  }
  func.func @transform_1(%arg0: i32) -> (i32, i32, i32) {
    %c0_i32 = arith.constant 0 : i32
    %c0_i32_0 = arith.constant 0 : i32
    %c0_i32_1 = arith.constant 0 : i32
    %c0_i32_2 = arith.constant 0 : i32
    return %c0_i32, %c0_i32_0, %c0_i32_1 : i32, i32, i32
  }
  func.func @transform_2(%arg0: i32) -> (i32, i32, i32) {
    %c0_i32 = arith.constant 0 : i32
    %c0_i32_0 = arith.constant 0 : i32
    %c0_i32_1 = arith.constant 0 : i32
    return %arg0, %c0_i32, %c0_i32_0 : i32, i32, i32
  }
}

</mosaic_0001>

<bundles_post_ra>
// kernel: tpu_custom_call.1
= control target key start
LH: loop header
LB: loop body
LE: loop exit
PB: predicated region body
PF: predicated region fallthrough
CT: control target
= control target key end

     0   :  { %7 = vsyncpa [#allocation3], 0  ;;  %s205_s0 = inlined_call_operand.hbm [shape: f32[8,8,128], index: 0, kind: input, shape index: {}]   ;;  %s206_s1 = inlined_call_operand.hbm [shape: f32[1,8,128], index: 1, kind: input, shape index: {}]   ;;  %s207_s2 = inlined_call_operand.hbm [shape: f32[8,8,128], index: 2, kind: output, shape index: {}]  }
   0x1   :  { %8 = vsyncpa [#allocation6], 0 }
   0x2   :  { %9 = vsyncpa [#allocation4], 0  ;;  %s14_s11 = sshll.u32 %s205_s0, 4  ;;  %s170_s12 = smov [#allocation2]   ;;  %s15_s11 = int_to_ptr.hbm [resolvable:$true] %s14_s11 }
   0x3   :  { %s16_s13 = sshll.u32 %s170_s12, 4  ;;  %s28_s16 = sshll.u32 %s206_s1, 4  ;;  %s17_s13 = int_to_ptr.vmem [resolvable:$true] %s16_s13  ;;  %s29_s16 = int_to_ptr.hbm [resolvable:$true] %s28_s16 }
   0x4   :  { %s171_s17 = smov 128   ;;  %s172_s18 = smov 8  }
   0x5   :  { %22 = dma.hbm_to_vmem [thread:$0]  %s15_s11, 1024, %s17_s13, [#allocation3], %s171_s17, %s171_s17, %s172_s18  }
   0x6   :  { %s173_s19 = smov [#allocation5]  }
   0x7   :  { %s30_s20 = sshll.u32 %s173_s19, 4  ;;  %s31_s20 = int_to_ptr.vmem [resolvable:$true] %s30_s20 }
   0x8   :  { %33 = dma.hbm_to_vmem [thread:$0]  %s29_s16, 128, %s31_s20, [#allocation6]  }
   0x9   :  { %164 = dma.done.wait [#allocation3], 1024  }
   0xa   :  { %165 = vsyncadd [#allocation3], 4294966272 }
   0xb   :  { %166 = dma.done.wait [#allocation6], 128  }
   0xc   :  { %167 = vsyncadd [#allocation6], 4294967168  ;;  %v42_v0 = vld [vmem:[#allocation2] sm:$0xff]  ;;  %v43_v2 = vld [vmem:[#allocation2 + $0x8] sm:$0xff]  ;;  %s174_s0 = smov [#allocation7]   ;;  %s73_s23 = sshll.u32 %s207_s2, 4  ;;  %s74_s23 = int_to_ptr.hbm [resolvable:$true] %s73_s23 }
   0xd   :  { %v50_v1 = vld [vmem:[#allocation5] sm:$0xff]  ;;  %v44_v5 = vld [vmem:[#allocation2 + $0x10] sm:$0xff]  ;;  %v45_v6 = vld [vmem:[#allocation2 + $0x18] sm:$0xff]  ;;  %s71_s1 = sshll.u32 %s174_s0, 4  ;;  %s72_s1 = int_to_ptr.vmem [resolvable:$true] %s71_s1 }
   0xe   :  { %v51_v3 = vmul.f32 %v50_v1, %v42_v0  ;;  %v52_v4 = vmul.f32 %v50_v1, %v43_v2  ;;  %v46_v7 = vld [vmem:[#allocation2 + $0x20] sm:$0xff]  ;;  %v53_v8 = vmul.f32 %v50_v1, %v44_v5  ;;  %v54_v9 = vmul.f32 %v50_v1, %v45_v6  ;;  %v47_v10 = vld [vmem:[#allocation2 + $0x28] sm:$0xff]  ;;  %v48_v11 = vld [vmem:[#allocation2 + $0x30] sm:$0xff] }
   0xf   :  { %v55_v12 = vmul.f32 %v50_v1, %v46_v7  ;;  %v49_v13 = vld [vmem:[#allocation2 + $0x38] sm:$0xff]  ;;  %v56_v14 = vmul.f32 %v50_v1, %v47_v10  ;;  %v57_v15 = vmul.f32 %v50_v1, %v48_v11 }
  0x10   :  { %59 = vst [vmem:[#allocation7] sm:$0xff] %v51_v3  ;;  %v58_v16 = vmul.f32 %v50_v1, %v49_v13 }
  0x11   :  { %60 = vst [vmem:[#allocation7 + $0x8] sm:$0xff] %v52_v4 }
  0x12   :  { %61 = vst [vmem:[#allocation7 + $0x10] sm:$0xff] %v53_v8 }
  0x13   :  { %62 = vst [vmem:[#allocation7 + $0x18] sm:$0xff] %v54_v9 }
  0x14   :  { %63 = vst [vmem:[#allocation7 + $0x20] sm:$0xff] %v55_v12 }
  0x15   :  { %64 = vst [vmem:[#allocation7 + $0x28] sm:$0xff] %v56_v14 }
  0x16   :  { %65 = vst [vmem:[#allocation7 + $0x30] sm:$0xff] %v57_v15 }
  0x17   :  { %66 = vst [vmem:[#allocation7 + $0x38] sm:$0xff] %v58_v16 }
  0x18   :  { %79 = dma.vmem_to_hbm [thread:$0]  %s72_s1, 1024, %s74_s23, [#allocation4], %s171_s17, %s171_s17, %s172_s18  }
  0x19   :  { %168 = dma.done.wait [#allocation4], 1024  }
  0x1a   :  { %169 = vsyncadd [#allocation4], 4294966272 }
  0x1b   :  { %84 = vsyncpa [#allocation3], 1 }
  0x1c   :  { %85 = vsyncpa [#allocation6], 1 }
  0x1d   :  { %86 = vsyncpa [#allocation4], 1 }

</bundles_post_ra>
